<compile_context>
chip_gen: v5e
topology: v5e:2x2
jax: 0.10.0
libtpu: 0.0.40
codegen_flags: <defaults>
</compile_context>

<pallas_src>
import jax
import jax.numpy as jnp
from jax.experimental import pallas as pl
from jax.experimental.pallas import tpu as pltpu


# bfloat16 MXU operands (~2x matmul throughput on v5e/v6e/v7x, half the strip
# load bytes / scratch VMEM).  Flip back to jnp.float32 for bit-tight fidelity
# (tolerance in the self-test adapts automatically).
MATMUL_DTYPE = jnp.bfloat16


# ----------------------------------------------------------------------------
# Wrapper-side weight preparation: fold the 3 horizontal taps and the width
# zero-padding of a 3x3 conv into a block-banded (W*C, W*C) matrix per kernel
# row, so the kernel does one lane-dense matmul per vertical tap.
# ----------------------------------------------------------------------------
def _build_row_weights(w_oihw, W):
    """PyTorch (Cout, Cin, 3, 3) conv weight -> (3, W*C, W*C) row weights."""
    C = w_oihw.shape[0]
    w_t = jnp.transpose(w_oihw, (2, 3, 1, 0)).astype(jnp.float32)  # (kh,kw,ci,co)
    wi = jnp.arange(W)[:, None]                 # input column
    wo = jnp.arange(W)[None, :]                 # output column
    dx = wi - wo + 1                            # horizontal tap index
    valid = ((dx >= 0) & (dx <= 2)).astype(jnp.float32)
    dxc = jnp.clip(dx, 0, 2)
    big = w_t[:, dxc]                           # (3, W, W, C, C) [kh, wi, wo, ci, co]
    big = big * valid[None, :, :, None, None]   # drop out-of-image taps (W padding)
    big = jnp.transpose(big, (0, 1, 3, 2, 4))   # (kh, wi, ci, wo, co)
    return big.reshape(3, W * C, W * C)


# ----------------------------------------------------------------------------
# Pallas kernel: whole residual block, lane-dense (B*H, W*C) working layout.
# ----------------------------------------------------------------------------
def _residual_block_kernel(x_ref, w1_ref, w2_ref, g1_ref, be1_ref,
                           g2_ref, be2_ref, s_ref, e_ref, alpha_ref,
                           out_ref, pad_s, stat_s, ss_s):
    B, H, WC = x_ref.shape
    BH = B * H
    C = g1_ref.shape[1]
    W = WC // C
    inv_n = 1.0 / (BH * W)          # 1 / (B*H*W) samples per channel
    eps = 1e-5

    # Zero only the two vertical halo rows of the padded scratch; write the
    # interior once, casting to the matmul dtype on the way in.
    zrow = jnp.zeros((B, 1, WC), MATMUL_DTYPE)
    pad_s[:, 0:1, :] = zrow
    pad_s[:, H + 1:H + 2, :] = zrow
    pad_s[:, 1:H + 1, :] = x_ref[...].astype(MATMUL_DTYPE)

    def conv(w_ref):
        # 3 accumulating (BH, W*C) @ (W*C, W*C) matmuls; operands are bf16,
        # accumulation is f32.  Accumulator starts from the dy=0 dot.
        acc = None
        for dy in range(3):
            strip = pad_s[:, dy:dy + H, :].reshape(BH, WC)
            part = jnp.dot(strip, w_ref[dy],
                           preferred_element_type=jnp.float32)
            acc = part if acc is None else acc + part
        return acc

    def batchnorm(y, g_ref, be_ref):
        # Fused training-mode BN (all f32):
        #   one reduction pass (sum / sum-of-squares) stacked into (2, W*C),
        #   ONE lane->channel matmul, per-channel scale/shift stacked into
        #   (2, C), ONE channel->lane expansion matmul, then one FMA pass.
        stat_s[0:1, :] = jnp.sum(y, axis=0, keepdims=True)        # col sums
        stat_s[1:2, :] = jnp.sum(y * y, axis=0, keepdims=True)    # col sq-sums
        ch = jnp.dot(stat_s[...], s_ref[...],
                     preferred_element_type=jnp.float32)          # (2, C)
        mean = ch[0:1, :] * inv_n
        var = ch[1:2, :] * inv_n - mean * mean                    # biased variance
        scale = g_ref[...] * jax.lax.rsqrt(var + eps)             # (1, C)
        ss_s[0:1, :] = scale
        ss_s[1:2, :] = be_ref[...] - mean * scale                 # shift
        ss_l = jnp.dot(ss_s[...], e_ref[...],
                       preferred_element_type=jnp.float32)        # (2, W*C)
        return y * ss_l[0:1, :] + ss_l[1:2, :]

    # conv1 -> bn1 -> PReLU   (conv bias omitted: cancels under batch-norm)
    y = batchnorm(conv(w1_ref), g1_ref, be1_ref)
    alpha = alpha_ref[0]
    y = jnp.where(y > 0.0, y, alpha * y)

    # Reuse the same scratch (halo rows still zero) as conv2's padded input;
    # single cast-to-bf16 happens here on the write.
    pad_s[:, 1:H + 1, :] = y.astype(MATMUL_DTYPE).reshape(B, H, WC)

    # conv2 -> bn2 -> residual add.  x is re-read here (not held live across
    # the convs/BNs) to keep vreg pressure low; the extra vld is free.
    y2 = batchnorm(conv(w2_ref), g2_ref, be2_ref)
    out_ref[...] = x_ref[...].reshape(BH, WC) + y2


# ----------------------------------------------------------------------------
# Wrapper: NCHW <-> lane-dense glue, weight/param prep, pallas_call.
# ----------------------------------------------------------------------------
def residual_block_pallas(x_nchw, params):
    # NOTE: in a full SRGAN the activations would stay in this lane-packed
    # layout between blocks; the transposes here are one-time glue.
    x = jnp.transpose(x_nchw, (0, 2, 3, 1)).astype(jnp.float32)     # NHWC
    B, H, W, C = x.shape
    WC = W * C
    BH = B * H
    x_rows = x.reshape(B, H, WC)                                    # lane-dense rows

    w1 = _build_row_weights(params["w1"], W).astype(MATMUL_DTYPE)
    w2 = _build_row_weights(params["w2"], W).astype(MATMUL_DTYPE)
    g1 = params["g1"].reshape(1, C).astype(jnp.float32)
    be1 = params["be1"].reshape(1, C).astype(jnp.float32)
    g2 = params["g2"].reshape(1, C).astype(jnp.float32)
    be2 = params["be2"].reshape(1, C).astype(jnp.float32)
    alpha = params["alpha"].reshape(1).astype(jnp.float32)
    # conv biases b1/b2 are intentionally NOT passed: they cancel under BN.

    eye = jnp.eye(C, dtype=jnp.float32)
    s_mat = jnp.tile(eye, (W, 1))     # (W*C, C): lane -> channel reduction
    e_mat = jnp.tile(eye, (1, W))     # (C, W*C): channel -> lane expansion

    vmem = pl.BlockSpec(memory_space=pltpu.MemorySpace.VMEM)
    smem = pl.BlockSpec(memory_space=pltpu.MemorySpace.SMEM)

    w_bytes = 2 * 3 * WC * WC * jnp.dtype(MATMUL_DTYPE).itemsize
    cost = pl.CostEstimate(
        flops=2 * 3 * 2 * BH * WC * WC            # two convs, 3 taps each
              + 2 * (2 * 2 * WC * C + 2 * 2 * C * WC),  # fused BN matmuls
        transcendentals=2 * C,                     # rsqrt per channel, per BN
        bytes_accessed=2 * BH * WC * 4             # x in + out
                       + w_bytes                   # row-weight matrices
                       + 2 * WC * C * 4            # s_mat + e_mat
                       + 4 * C * 4 + 4)            # BN params + alpha
    out = pl.pallas_call(
        _residual_block_kernel,
        out_shape=jax.ShapeDtypeStruct((BH, WC), jnp.float32),
        in_specs=[vmem, vmem, vmem,         # x_rows, w1, w2
                  vmem, vmem, vmem, vmem,   # g1, be1, g2, be2
                  vmem, vmem,               # S (reduce), E (expand)
                  smem],                    # alpha (scalar)
        out_specs=vmem,
        scratch_shapes=[
            pltpu.VMEM((B, H + 2, WC), MATMUL_DTYPE),   # padded conv input
            pltpu.VMEM((2, WC), jnp.float32),           # stacked BN stats
            pltpu.VMEM((2, C), jnp.float32),            # stacked scale/shift
        ],
        compiler_params=pltpu.CompilerParams(
            vmem_limit_bytes=32 * 1024 * 1024),
        cost_estimate=cost,
    )(x_rows, w1, w2, g1, be1, g2, be2, s_mat, e_mat, alpha)

    out = out.reshape(B, H, W, C)
    return jnp.transpose(out, (0, 3, 1, 2))                         # back to NCHW


# ----------------------------------------------------------------------------
# Pure-JAX reference (NCHW, lax.conv, bias included) for correctness checking.
# ----------------------------------------------------------------------------
def residual_block_ref(x, p):
    def conv(x, w, b):
        y = jax.lax.conv_general_dilated(
            x, w, window_strides=(1, 1), padding="SAME",
            dimension_numbers=("NCHW", "OIHW", "NCHW"))
        return y + b[None, :, None, None]

    def bn(y, g, be, eps=1e-5):
        mean = jnp.mean(y, axis=(0, 2, 3), keepdims=True)
        var = jnp.mean((y - mean) ** 2, axis=(0, 2, 3), keepdims=True)
        return (y - mean) / jnp.sqrt(var + eps) * g[None, :, None, None] \
               + be[None, :, None, None]

    y = conv(x, p["w1"], p["b1"])
    y = bn(y, p["g1"], p["be1"])
    y = jnp.where(y > 0, y, p["alpha"] * y)
    y = conv(y, p["w2"], p["b2"])
    y = bn(y, p["g2"], p["be2"])
    return x + y


if __name__ == "__main__":
    B, C, H, W = 2, 8, 16, 16   # in_features = 8  (W*C = 128 -> full lane width)

    key = jax.random.PRNGKey(0)
    ks = jax.random.split(key, 9)
    params = {
        "w1": 0.1 * jax.random.normal(ks[0], (C, C, 3, 3), jnp.float32),
        "b1": 0.1 * jax.random.normal(ks[1], (C,), jnp.float32),
        "g1": 1.0 + 0.1 * jax.random.normal(ks[2], (C,), jnp.float32),
        "be1": 0.1 * jax.random.normal(ks[3], (C,), jnp.float32),
        "alpha": jnp.asarray(0.25, jnp.float32),   # PReLU default init
        "w2": 0.1 * jax.random.normal(ks[4], (C, C, 3, 3), jnp.float32),
        "b2": 0.1 * jax.random.normal(ks[5], (C,), jnp.float32),
        "g2": 1.0 + 0.1 * jax.random.normal(ks[6], (C,), jnp.float32),
        "be2": 0.1 * jax.random.normal(ks[7], (C,), jnp.float32),
    }
    x = jax.random.normal(ks[8], (B, C, H, W), jnp.float32)

    out = residual_block_pallas(x, params)
    out = jax.block_until_ready(out)

    ref = residual_block_ref(x, params)
    tol = 1e-4 if MATMUL_DTYPE == jnp.float32 else 2e-2
    assert out.shape == (B, C, H, W)
    assert jnp.allclose(out, ref, rtol=tol, atol=tol), \
        f"max abs err = {jnp.max(jnp.abs(out - ref))}"

    print("KERNEL_OK")
</pallas_src>

<mosaic_0001>
module attributes {stable_mosaic.version = 11 : i64} {
  func.func @_residual_block_kernel(%arg0: memref<2x16x128xf32, #tpu.memory_space<vmem>>, %arg1: memref<3x128x128xbf16, #tpu.memory_space<vmem>>, %arg2: memref<3x128x128xbf16, #tpu.memory_space<vmem>>, %arg3: memref<1x8xf32, #tpu.memory_space<vmem>>, %arg4: memref<1x8xf32, #tpu.memory_space<vmem>>, %arg5: memref<1x8xf32, #tpu.memory_space<vmem>>, %arg6: memref<1x8xf32, #tpu.memory_space<vmem>>, %arg7: memref<128x8xf32, #tpu.memory_space<vmem>>, %arg8: memref<8x128xf32, #tpu.memory_space<vmem>>, %arg9: memref<1xf32, #tpu.memory_space<smem>>, %arg10: memref<32x128xf32, #tpu.memory_space<vmem>>, %arg11: memref<2x18x128xbf16, #tpu.memory_space<vmem>>, %arg12: memref<2x128xf32, #tpu.memory_space<vmem>>, %arg13: memref<2x8xf32, #tpu.memory_space<vmem>>) attributes {dimension_semantics = [], scalar_prefetch = 0 : i64, scratch_operands = 3 : i64, tpu.core_type = #tpu.core_type<tc>} {
    %cst = arith.constant 0.000000e+00 : bf16
    %0 = vector.broadcast %cst : bf16 to vector<2x1x128xbf16>
    %c0 = arith.constant 0 : index
    %c0_0 = arith.constant 0 : index
    %c0_1 = arith.constant 0 : index
    %1 = vector.load %arg11[%c0, %c0_0, %c0_1] : memref<2x18x128xbf16, #tpu.memory_space<vmem>>, vector<2x1x128xbf16>
    tpu.vector_store %arg11[%c0, %c0_0, %c0_1], %0 {strides = array<i32>} : memref<2x18x128xbf16, #tpu.memory_space<vmem>>, vector<2x1x128xbf16>,
    %c0_2 = arith.constant 0 : index
    %c17 = arith.constant 17 : index
    %c0_3 = arith.constant 0 : index
    %2 = vector.load %arg11[%c0_2, %c17, %c0_3] : memref<2x18x128xbf16, #tpu.memory_space<vmem>>, vector<2x1x128xbf16>
    tpu.vector_store %arg11[%c0_2, %c17, %c0_3], %0 {strides = array<i32>} : memref<2x18x128xbf16, #tpu.memory_space<vmem>>, vector<2x1x128xbf16>,
    %c0_4 = arith.constant 0 : index
    %c0_5 = arith.constant 0 : index
    %c0_6 = arith.constant 0 : index
    %3 = vector.load %arg0[%c0_4, %c0_5, %c0_6] : memref<2x16x128xf32, #tpu.memory_space<vmem>>, vector<2x16x128xf32>
    %4 = arith.truncf %3 : vector<2x16x128xf32> to vector<2x16x128xbf16>
    %c0_7 = arith.constant 0 : index
    %c1 = arith.constant 1 : index
    %c0_8 = arith.constant 0 : index
    %5 = vector.load %arg11[%c0_7, %c1, %c0_8] : memref<2x18x128xbf16, #tpu.memory_space<vmem>>, vector<2x16x128xbf16>
    tpu.vector_store %arg11[%c0_7, %c1, %c0_8], %4 {strides = array<i32>} : memref<2x18x128xbf16, #tpu.memory_space<vmem>>, vector<2x16x128xbf16>,
    %c0_9 = arith.constant 0 : index
    %c0_10 = arith.constant 0 : index
    %c0_11 = arith.constant 0 : index
    %6 = vector.load %arg11[%c0_9, %c0_10, %c0_11] : memref<2x18x128xbf16, #tpu.memory_space<vmem>>, vector<2x16x128xbf16>
    %7 = vector.shape_cast %6 : vector<2x16x128xbf16> to vector<32x128xbf16>
    %c0_12 = arith.constant 0 : index
    %c0_13 = arith.constant 0 : index
    %c0_14 = arith.constant 0 : index
    %8 = vector.load %arg1[%c0_12, %c0_13, %c0_14] : memref<3x128x128xbf16, #tpu.memory_space<vmem>>, vector<1x128x128xbf16>
    %9 = vector.shape_cast %8 : vector<1x128x128xbf16> to vector<128x128xbf16>
    %cst_15 = arith.constant dense<0.000000e+00> : vector<32x128xf32>
    %10 = tpu.matmul %7, %9, %cst_15 {dimension_numbers = #tpu.dot_dimension_numbers<[1], [0], [0], [1], [0, 0, 1, 1], [], []>} : vector<32x128xbf16>, vector<128x128xbf16>, vector<32x128xf32> -> vector<32x128xf32>
    %c0_16 = arith.constant 0 : index
    %c1_17 = arith.constant 1 : index
    %c0_18 = arith.constant 0 : index
    %11 = vector.load %arg11[%c0_16, %c1_17, %c0_18] : memref<2x18x128xbf16, #tpu.memory_space<vmem>>, vector<2x16x128xbf16>
    %12 = vector.shape_cast %11 : vector<2x16x128xbf16> to vector<32x128xbf16>
    %c1_19 = arith.constant 1 : index
    %c0_20 = arith.constant 0 : index
    %c0_21 = arith.constant 0 : index
    %13 = vector.load %arg1[%c1_19, %c0_20, %c0_21] : memref<3x128x128xbf16, #tpu.memory_space<vmem>>, vector<1x128x128xbf16>
    %14 = vector.shape_cast %13 : vector<1x128x128xbf16> to vector<128x128xbf16>
    %cst_22 = arith.constant dense<0.000000e+00> : vector<32x128xf32>
    %15 = tpu.matmul %12, %14, %cst_22 {dimension_numbers = #tpu.dot_dimension_numbers<[1], [0], [0], [1], [0, 0, 1, 1], [], []>} : vector<32x128xbf16>, vector<128x128xbf16>, vector<32x128xf32> -> vector<32x128xf32>
    %16 = arith.addf %10, %15 : vector<32x128xf32>
    %c0_23 = arith.constant 0 : index
    %c2 = arith.constant 2 : index
    %c0_24 = arith.constant 0 : index
    %17 = vector.load %arg11[%c0_23, %c2, %c0_24] : memref<2x18x128xbf16, #tpu.memory_space<vmem>>, vector<2x16x128xbf16>
    %18 = vector.shape_cast %17 : vector<2x16x128xbf16> to vector<32x128xbf16>
    %c2_25 = arith.constant 2 : index
    %c0_26 = arith.constant 0 : index
    %c0_27 = arith.constant 0 : index
    %19 = vector.load %arg1[%c2_25, %c0_26, %c0_27] : memref<3x128x128xbf16, #tpu.memory_space<vmem>>, vector<1x128x128xbf16>
    %20 = vector.shape_cast %19 : vector<1x128x128xbf16> to vector<128x128xbf16>
    %cst_28 = arith.constant dense<0.000000e+00> : vector<32x128xf32>
    %21 = tpu.matmul %18, %20, %cst_28 {dimension_numbers = #tpu.dot_dimension_numbers<[1], [0], [0], [1], [0, 0, 1, 1], [], []>} : vector<32x128xbf16>, vector<128x128xbf16>, vector<32x128xf32> -> vector<32x128xf32>
    %22 = arith.addf %16, %21 : vector<32x128xf32>
    %cst_29 = arith.constant dense<0.000000e+00> : vector<128xf32>
    %23 = vector.multi_reduction <add>, %22, %cst_29 [0] : vector<32x128xf32> to vector<128xf32>
    %24 = vector.shape_cast %23 : vector<128xf32> to vector<1x128xf32>
    %c0_30 = arith.constant 0 : index
    %c0_31 = arith.constant 0 : index
    %25 = vector.load %arg12[%c0_30, %c0_31] : memref<2x128xf32, #tpu.memory_space<vmem>>, vector<1x128xf32>
    tpu.vector_store %arg12[%c0_30, %c0_31], %24 {strides = array<i32>} : memref<2x128xf32, #tpu.memory_space<vmem>>, vector<1x128xf32>,
    %26 = arith.mulf %22, %22 : vector<32x128xf32>
    %cst_32 = arith.constant dense<0.000000e+00> : vector<128xf32>
    %27 = vector.multi_reduction <add>, %26, %cst_32 [0] : vector<32x128xf32> to vector<128xf32>
    %28 = vector.shape_cast %27 : vector<128xf32> to vector<1x128xf32>
    %c1_33 = arith.constant 1 : index
    %c0_34 = arith.constant 0 : index
    %29 = vector.load %arg12[%c1_33, %c0_34] : memref<2x128xf32, #tpu.memory_space<vmem>>, vector<1x128xf32>
    tpu.vector_store %arg12[%c1_33, %c0_34], %28 {strides = array<i32>} : memref<2x128xf32, #tpu.memory_space<vmem>>, vector<1x128xf32>,
    %c0_35 = arith.constant 0 : index
    %c0_36 = arith.constant 0 : index
    %30 = vector.load %arg12[%c0_35, %c0_36] : memref<2x128xf32, #tpu.memory_space<vmem>>, vector<2x128xf32>
    %c0_37 = arith.constant 0 : index
    %c0_38 = arith.constant 0 : index
    %31 = vector.load %arg7[%c0_37, %c0_38] : memref<128x8xf32, #tpu.memory_space<vmem>>, vector<128x8xf32>
    %cst_39 = arith.constant dense<0.000000e+00> : vector<2x8xf32>
    %32 = tpu.matmul %30, %31, %cst_39 {dimension_numbers = #tpu.dot_dimension_numbers<[1], [0], [0], [1], [0, 0, 1, 1], [], []>} : vector<2x128xf32>, vector<128x8xf32>, vector<2x8xf32> -> vector<2x8xf32>
    %33 = vector.extract_strided_slice %32 {offsets = [0, 0], sizes = [1, 8], strides = [1, 1]} : vector<2x8xf32> to vector<1x8xf32>
    %cst_40 = arith.constant 0.001953125 : f32
    %34 = vector.broadcast %cst_40 : f32 to vector<1x8xf32>
    %35 = arith.mulf %33, %34 : vector<1x8xf32>
    %36 = vector.extract_strided_slice %32 {offsets = [1, 0], sizes = [1, 8], strides = [1, 1]} : vector<2x8xf32> to vector<1x8xf32>
    %cst_41 = arith.constant 0.001953125 : f32
    %37 = vector.broadcast %cst_41 : f32 to vector<1x8xf32>
    %38 = arith.mulf %36, %37 : vector<1x8xf32>
    %39 = arith.mulf %35, %35 : vector<1x8xf32>
    %40 = arith.subf %38, %39 : vector<1x8xf32>
    %c0_42 = arith.constant 0 : index
    %c0_43 = arith.constant 0 : index
    %41 = vector.load %arg3[%c0_42, %c0_43] : memref<1x8xf32, #tpu.memory_space<vmem>>, vector<1x8xf32>
    %cst_44 = arith.constant 9.99999974E-6 : f32
    %42 = vector.broadcast %cst_44 : f32 to vector<1x8xf32>
    %43 = arith.addf %40, %42 : vector<1x8xf32>
    %44 = math.rsqrt %43 : vector<1x8xf32>
    %45 = arith.mulf %41, %44 : vector<1x8xf32>
    %c0_45 = arith.constant 0 : index
    %c0_46 = arith.constant 0 : index
    %46 = vector.load %arg13[%c0_45, %c0_46] : memref<2x8xf32, #tpu.memory_space<vmem>>, vector<1x8xf32>
    tpu.vector_store %arg13[%c0_45, %c0_46], %45 {strides = array<i32>} : memref<2x8xf32, #tpu.memory_space<vmem>>, vector<1x8xf32>,
    %c0_47 = arith.constant 0 : index
    %c0_48 = arith.constant 0 : index
    %47 = vector.load %arg4[%c0_47, %c0_48] : memref<1x8xf32, #tpu.memory_space<vmem>>, vector<1x8xf32>
    %48 = arith.mulf %35, %45 : vector<1x8xf32>
    %49 = arith.subf %47, %48 : vector<1x8xf32>
    %c1_49 = arith.constant 1 : index
    %c0_50 = arith.constant 0 : index
    %50 = vector.load %arg13[%c1_49, %c0_50] : memref<2x8xf32, #tpu.memory_space<vmem>>, vector<1x8xf32>
    tpu.vector_store %arg13[%c1_49, %c0_50], %49 {strides = array<i32>} : memref<2x8xf32, #tpu.memory_space<vmem>>, vector<1x8xf32>,
    %c0_51 = arith.constant 0 : index
    %c0_52 = arith.constant 0 : index
    %51 = vector.load %arg13[%c0_51, %c0_52] : memref<2x8xf32, #tpu.memory_space<vmem>>, vector<2x8xf32>
    %c0_53 = arith.constant 0 : index
    %c0_54 = arith.constant 0 : index
    %52 = vector.load %arg8[%c0_53, %c0_54] : memref<8x128xf32, #tpu.memory_space<vmem>>, vector<8x128xf32>
    %cst_55 = arith.constant dense<0.000000e+00> : vector<2x128xf32>
    %53 = tpu.matmul %51, %52, %cst_55 {dimension_numbers = #tpu.dot_dimension_numbers<[1], [0], [0], [1], [0, 0, 1, 1], [], []>} : vector<2x8xf32>, vector<8x128xf32>, vector<2x128xf32> -> vector<2x128xf32>
    %54 = vector.extract_strided_slice %53 {offsets = [0, 0], sizes = [1, 128], strides = [1, 1]} : vector<2x128xf32> to vector<1x128xf32>
    %55 = vector.broadcast %54 : vector<1x128xf32> to vector<32x128xf32>
    %56 = arith.mulf %22, %55 : vector<32x128xf32>
    %57 = vector.extract_strided_slice %53 {offsets = [1, 0], sizes = [1, 128], strides = [1, 1]} : vector<2x128xf32> to vector<1x128xf32>
    %58 = vector.broadcast %57 : vector<1x128xf32> to vector<32x128xf32>
    %59 = arith.addf %56, %58 : vector<32x128xf32>
    %c0_56 = arith.constant 0 : index
    %60 = memref.load %arg9[%c0_56] : memref<1xf32, #tpu.memory_space<smem>>
    %cst_57 = arith.constant 0.000000e+00 : f32
    %61 = vector.broadcast %cst_57 : f32 to vector<32x128xf32>
    %62 = arith.cmpf ogt, %59, %61 : vector<32x128xf32>
    %63 = vector.broadcast %60 : f32 to vector<32x128xf32>
    %64 = arith.mulf %63, %59 : vector<32x128xf32>
    %65 = arith.select %62, %59, %64 : vector<32x128xi1>, vector<32x128xf32>
    %66 = arith.truncf %65 : vector<32x128xf32> to vector<32x128xbf16>
    %67 = vector.shape_cast %66 : vector<32x128xbf16> to vector<2x16x128xbf16>
    %c0_58 = arith.constant 0 : index
    %c1_59 = arith.constant 1 : index
    %c0_60 = arith.constant 0 : index
    %68 = vector.load %arg11[%c0_58, %c1_59, %c0_60] : memref<2x18x128xbf16, #tpu.memory_space<vmem>>, vector<2x16x128xbf16>
    tpu.vector_store %arg11[%c0_58, %c1_59, %c0_60], %67 {strides = array<i32>} : memref<2x18x128xbf16, #tpu.memory_space<vmem>>, vector<2x16x128xbf16>,
    %c0_61 = arith.constant 0 : index
    %c0_62 = arith.constant 0 : index
    %c0_63 = arith.constant 0 : index
    %69 = vector.load %arg11[%c0_61, %c0_62, %c0_63] : memref<2x18x128xbf16, #tpu.memory_space<vmem>>, vector<2x16x128xbf16>
    %70 = vector.shape_cast %69 : vector<2x16x128xbf16> to vector<32x128xbf16>
    %c0_64 = arith.constant 0 : index
    %c0_65 = arith.constant 0 : index
    %c0_66 = arith.constant 0 : index
    %71 = vector.load %arg2[%c0_64, %c0_65, %c0_66] : memref<3x128x128xbf16, #tpu.memory_space<vmem>>, vector<1x128x128xbf16>
    %72 = vector.shape_cast %71 : vector<1x128x128xbf16> to vector<128x128xbf16>
    %cst_67 = arith.constant dense<0.000000e+00> : vector<32x128xf32>
    %73 = tpu.matmul %70, %72, %cst_67 {dimension_numbers = #tpu.dot_dimension_numbers<[1], [0], [0], [1], [0, 0, 1, 1], [], []>} : vector<32x128xbf16>, vector<128x128xbf16>, vector<32x128xf32> -> vector<32x128xf32>
    %c0_68 = arith.constant 0 : index
    %c1_69 = arith.constant 1 : index
    %c0_70 = arith.constant 0 : index
    %74 = vector.load %arg11[%c0_68, %c1_69, %c0_70] : memref<2x18x128xbf16, #tpu.memory_space<vmem>>, vector<2x16x128xbf16>
    %75 = vector.shape_cast %74 : vector<2x16x128xbf16> to vector<32x128xbf16>
    %c1_71 = arith.constant 1 : index
    %c0_72 = arith.constant 0 : index
    %c0_73 = arith.constant 0 : index
    %76 = vector.load %arg2[%c1_71, %c0_72, %c0_73] : memref<3x128x128xbf16, #tpu.memory_space<vmem>>, vector<1x128x128xbf16>
    %77 = vector.shape_cast %76 : vector<1x128x128xbf16> to vector<128x128xbf16>
    %cst_74 = arith.constant dense<0.000000e+00> : vector<32x128xf32>
    %78 = tpu.matmul %75, %77, %cst_74 {dimension_numbers = #tpu.dot_dimension_numbers<[1], [0], [0], [1], [0, 0, 1, 1], [], []>} : vector<32x128xbf16>, vector<128x128xbf16>, vector<32x128xf32> -> vector<32x128xf32>
    %79 = arith.addf %73, %78 : vector<32x128xf32>
    %c0_75 = arith.constant 0 : index
    %c2_76 = arith.constant 2 : index
    %c0_77 = arith.constant 0 : index
    %80 = vector.load %arg11[%c0_75, %c2_76, %c0_77] : memref<2x18x128xbf16, #tpu.memory_space<vmem>>, vector<2x16x128xbf16>
    %81 = vector.shape_cast %80 : vector<2x16x128xbf16> to vector<32x128xbf16>
    %c2_78 = arith.constant 2 : index
    %c0_79 = arith.constant 0 : index
    %c0_80 = arith.constant 0 : index
    %82 = vector.load %arg2[%c2_78, %c0_79, %c0_80] : memref<3x128x128xbf16, #tpu.memory_space<vmem>>, vector<1x128x128xbf16>
    %83 = vector.shape_cast %82 : vector<1x128x128xbf16> to vector<128x128xbf16>
    %cst_81 = arith.constant dense<0.000000e+00> : vector<32x128xf32>
    %84 = tpu.matmul %81, %83, %cst_81 {dimension_numbers = #tpu.dot_dimension_numbers<[1], [0], [0], [1], [0, 0, 1, 1], [], []>} : vector<32x128xbf16>, vector<128x128xbf16>, vector<32x128xf32> -> vector<32x128xf32>
    %85 = arith.addf %79, %84 : vector<32x128xf32>
    %cst_82 = arith.constant dense<0.000000e+00> : vector<128xf32>
    %86 = vector.multi_reduction <add>, %85, %cst_82 [0] : vector<32x128xf32> to vector<128xf32>
    %87 = vector.shape_cast %86 : vector<128xf32> to vector<1x128xf32>
    %c0_83 = arith.constant 0 : index
    %c0_84 = arith.constant 0 : index
    %88 = vector.load %arg12[%c0_83, %c0_84] : memref<2x128xf32, #tpu.memory_space<vmem>>, vector<1x128xf32>
    tpu.vector_store %arg12[%c0_83, %c0_84], %87 {strides = array<i32>} : memref<2x128xf32, #tpu.memory_space<vmem>>, vector<1x128xf32>,
    %89 = arith.mulf %85, %85 : vector<32x128xf32>
    %cst_85 = arith.constant dense<0.000000e+00> : vector<128xf32>
    %90 = vector.multi_reduction <add>, %89, %cst_85 [0] : vector<32x128xf32> to vector<128xf32>
    %91 = vector.shape_cast %90 : vector<128xf32> to vector<1x128xf32>
    %c1_86 = arith.constant 1 : index
    %c0_87 = arith.constant 0 : index
    %92 = vector.load %arg12[%c1_86, %c0_87] : memref<2x128xf32, #tpu.memory_space<vmem>>, vector<1x128xf32>
    tpu.vector_store %arg12[%c1_86, %c0_87], %91 {strides = array<i32>} : memref<2x128xf32, #tpu.memory_space<vmem>>, vector<1x128xf32>,
    %c0_88 = arith.constant 0 : index
    %c0_89 = arith.constant 0 : index
    %93 = vector.load %arg12[%c0_88, %c0_89] : memref<2x128xf32, #tpu.memory_space<vmem>>, vector<2x128xf32>
    %c0_90 = arith.constant 0 : index
    %c0_91 = arith.constant 0 : index
    %94 = vector.load %arg7[%c0_90, %c0_91] : memref<128x8xf32, #tpu.memory_space<vmem>>, vector<128x8xf32>
    %cst_92 = arith.constant dense<0.000000e+00> : vector<2x8xf32>
    %95 = tpu.matmul %93, %94, %cst_92 {dimension_numbers = #tpu.dot_dimension_numbers<[1], [0], [0], [1], [0, 0, 1, 1], [], []>} : vector<2x128xf32>, vector<128x8xf32>, vector<2x8xf32> -> vector<2x8xf32>
    %96 = vector.extract_strided_slice %95 {offsets = [0, 0], sizes = [1, 8], strides = [1, 1]} : vector<2x8xf32> to vector<1x8xf32>
    %cst_93 = arith.constant 0.001953125 : f32
    %97 = vector.broadcast %cst_93 : f32 to vector<1x8xf32>
    %98 = arith.mulf %96, %97 : vector<1x8xf32>
    %99 = vector.extract_strided_slice %95 {offsets = [1, 0], sizes = [1, 8], strides = [1, 1]} : vector<2x8xf32> to vector<1x8xf32>
    %cst_94 = arith.constant 0.001953125 : f32
    %100 = vector.broadcast %cst_94 : f32 to vector<1x8xf32>
    %101 = arith.mulf %99, %100 : vector<1x8xf32>
    %102 = arith.mulf %98, %98 : vector<1x8xf32>
    %103 = arith.subf %101, %102 : vector<1x8xf32>
    %c0_95 = arith.constant 0 : index
    %c0_96 = arith.constant 0 : index
    %104 = vector.load %arg5[%c0_95, %c0_96] : memref<1x8xf32, #tpu.memory_space<vmem>>, vector<1x8xf32>
    %cst_97 = arith.constant 9.99999974E-6 : f32
    %105 = vector.broadcast %cst_97 : f32 to vector<1x8xf32>
    %106 = arith.addf %103, %105 : vector<1x8xf32>
    %107 = math.rsqrt %106 : vector<1x8xf32>
    %108 = arith.mulf %104, %107 : vector<1x8xf32>
    %c0_98 = arith.constant 0 : index
    %c0_99 = arith.constant 0 : index
    %109 = vector.load %arg13[%c0_98, %c0_99] : memref<2x8xf32, #tpu.memory_space<vmem>>, vector<1x8xf32>
    tpu.vector_store %arg13[%c0_98, %c0_99], %108 {strides = array<i32>} : memref<2x8xf32, #tpu.memory_space<vmem>>, vector<1x8xf32>,
    %c0_100 = arith.constant 0 : index
    %c0_101 = arith.constant 0 : index
    %110 = vector.load %arg6[%c0_100, %c0_101] : memref<1x8xf32, #tpu.memory_space<vmem>>, vector<1x8xf32>
    %111 = arith.mulf %98, %108 : vector<1x8xf32>
    %112 = arith.subf %110, %111 : vector<1x8xf32>
    %c1_102 = arith.constant 1 : index
    %c0_103 = arith.constant 0 : index
    %113 = vector.load %arg13[%c1_102, %c0_103] : memref<2x8xf32, #tpu.memory_space<vmem>>, vector<1x8xf32>
    tpu.vector_store %arg13[%c1_102, %c0_103], %112 {strides = array<i32>} : memref<2x8xf32, #tpu.memory_space<vmem>>, vector<1x8xf32>,
    %c0_104 = arith.constant 0 : index
    %c0_105 = arith.constant 0 : index
    %114 = vector.load %arg13[%c0_104, %c0_105] : memref<2x8xf32, #tpu.memory_space<vmem>>, vector<2x8xf32>
    %c0_106 = arith.constant 0 : index
    %c0_107 = arith.constant 0 : index
    %115 = vector.load %arg8[%c0_106, %c0_107] : memref<8x128xf32, #tpu.memory_space<vmem>>, vector<8x128xf32>
    %cst_108 = arith.constant dense<0.000000e+00> : vector<2x128xf32>
    %116 = tpu.matmul %114, %115, %cst_108 {dimension_numbers = #tpu.dot_dimension_numbers<[1], [0], [0], [1], [0, 0, 1, 1], [], []>} : vector<2x8xf32>, vector<8x128xf32>, vector<2x128xf32> -> vector<2x128xf32>
    %117 = vector.extract_strided_slice %116 {offsets = [0, 0], sizes = [1, 128], strides = [1, 1]} : vector<2x128xf32> to vector<1x128xf32>
    %118 = vector.broadcast %117 : vector<1x128xf32> to vector<32x128xf32>
    %119 = arith.mulf %85, %118 : vector<32x128xf32>
    %120 = vector.extract_strided_slice %116 {offsets = [1, 0], sizes = [1, 128], strides = [1, 1]} : vector<2x128xf32> to vector<1x128xf32>
    %121 = vector.broadcast %120 : vector<1x128xf32> to vector<32x128xf32>
    %122 = arith.addf %119, %121 : vector<32x128xf32>
    %c0_109 = arith.constant 0 : index
    %c0_110 = arith.constant 0 : index
    %c0_111 = arith.constant 0 : index
    %123 = vector.load %arg0[%c0_109, %c0_110, %c0_111] : memref<2x16x128xf32, #tpu.memory_space<vmem>>, vector<2x16x128xf32>
    %124 = vector.shape_cast %123 : vector<2x16x128xf32> to vector<32x128xf32>
    %125 = arith.addf %124, %122 : vector<32x128xf32>
    %c0_112 = arith.constant 0 : index
    %c0_113 = arith.constant 0 : index
    %126 = vector.load %arg10[%c0_112, %c0_113] : memref<32x128xf32, #tpu.memory_space<vmem>>, vector<32x128xf32>
    tpu.vector_store %arg10[%c0_112, %c0_113], %125 {strides = array<i32>} : memref<32x128xf32, #tpu.memory_space<vmem>>, vector<32x128xf32>,
    return
  }
}

</mosaic_0001>

<bundles_post_ra>
// kernel: tpu_custom_call.1
= control target key start
LH: loop header
LB: loop body
LE: loop exit
PB: predicated region body
PF: predicated region fallthrough
CT: control target
= control target key end

     0   :  { %16 = vsyncpa [#allocation7], 0  ;;  %s1955_s0 = inlined_call_operand.vmem [shape: f32[2,16,128], index: 0, kind: input, shape index: {}]   ;;  %s1956_s1 = inlined_call_operand.hbm [shape: bf16[3,128,128], index: 1, kind: input, shape index: {}]   ;;  %s1957_s2 = inlined_call_operand.hbm [shape: bf16[3,128,128], index: 2, kind: input, shape index: {}]   ;;  %s1958_s3 = inlined_call_operand.vmem [shape: f32[1,8], index: 3, kind: input, shape index: {}]   ;;  %s1959_s4 = inlined_call_operand.vmem [shape: f32[1,8], index: 4, kind: input, shape index: {}]   ;;  %s1960_s5 = inlined_call_operand.vmem [shape: f32[1,8], index: 5, kind: input, shape index: {}]   ;;  %s1961_s6 = inlined_call_operand.vmem [shape: f32[1,8], index: 6, kind: input, shape index: {}]   ;;  %s1962_s7 = inlined_call_operand.vmem [shape: f32[128,8], index: 7, kind: input, shape index: {}]   ;;  %s1963_s8 = inlined_call_operand.vmem [shape: f32[8,128], index: 8, kind: input, shape index: {}]   ;;  %s1964_s9 = inlined_call_operand.<no memory space> [shape: f32[1], index: 9, kind: input, shape index: {}]   ;;  %s1965_s10 = inlined_call_operand.hbm [shape: f32[32,128], index: 10, kind: output, shape index: {}]  }
   0x1   :  { %17 = vsyncpa [#allocation10], 0 }
   0x2   :  { %18 = vsyncpa [#allocation8], 0  ;;  %s25_s15 = sshll.u32 %s1956_s1, 4  ;;  %s1584_s16 = smov [#allocation6]   ;;  %s26_s15 = int_to_ptr.hbm [resolvable:$true] %s25_s15 }
   0x3   :  { %s27_s17 = sshll.u32 %s1584_s16, 4  ;;  %s38_s20 = sshll.u32 %s1957_s2, 4  ;;  %s28_s17 = int_to_ptr.vmem [resolvable:$true] %s27_s17  ;;  %s39_s20 = int_to_ptr.hbm [resolvable:$true] %s38_s20 }
   0x4   :  { %s1585_s21 = smov 64   ;;  %s1586_s22 = smov 4  }
   0x5   :  { %33 = dma.hbm_to_vmem [thread:$0]  %s26_s15, 3072, %s28_s17, [#allocation7], %s1585_s21, %s1585_s21, %s1586_s22  }
   0x6   :  { %s1587_s23 = smov [#allocation9]  }
   0x7   :  { %s40_s24 = sshll.u32 %s1587_s23, 4  ;;  %s41_s24 = int_to_ptr.vmem [resolvable:$true] %s40_s24 }
   0x8   :  { %46 = dma.hbm_to_vmem [thread:$0]  %s39_s20, 3072, %s41_s24, [#allocation10], %s1585_s21, %s1585_s21, %s1586_s22  }
   0x9   :  { %1578 = dma.done.wait [#allocation7], 3072  }
   0xa   :  { %1579 = vsyncadd [#allocation7], 4294964224 }
   0xb   :  { %1580 = dma.done.wait [#allocation10], 3072  }
   0xc   :  { %1581 = vsyncadd [#allocation10], 4294964224  ;;  %v1460_v0 = vld [vmem:[#allocation6 + $0x78] sm:$0xff]  ;;  %v1459_v3 = vld [vmem:[#allocation6 + $0x70] sm:$0xff]  ;;  %vm70_vm0 = vcmask 1040384   ;;  %vm137_vm6 = vcmask 1043456  }
   0xd   :  { %v1452_v1 = vld [vmem:[#allocation6 + $0x38] sm:$0xff]  ;;  %299 = vmatpush.bf16.msra.mxu0 %v1460_v0  ;;  %v1451_v4 = vld [vmem:[#allocation6 + $0x30] sm:$0xff]  ;;  %vm71_vm1 = vsmask.f32 256  ;;  %vm79_vm2 = vsmask.f32 7938 }
   0xe   :  { %v1468_v2 = vld [vmem:[#allocation6 + $0xb8] sm:$0xff]  ;;  %378 = vmatpush.bf16.msra.mxu1 %v1452_v1  ;;  %v1467_v5 = vld [vmem:[#allocation6 + $0xb0] sm:$0xff]  ;;  %vm1653_vm3 = vmand %vm70_vm0, %vm71_vm1  ;;  %vm95_vm5 = vsmask.f32 4368  ;;  %vm403_vm9 = vcmask 1042432   ;;  %vm404_vm10 = vcmask 1046532  }
   0xf   :  { %493 = vmatpush.bf16.msra.mxu2 %v1468_v2  ;;  %v1458_v7 = vld [vmem:[#allocation6 + $0x68] sm:$0xff]  ;;  %vm1658_vm4 = vmand %vm70_vm0, %vm79_vm2  ;;  %v1457_v11 = vld [vmem:[#allocation6 + $0x60] sm:$0xff]  ;;  %vm175_vm11 = vsmask.f32 3328  ;;  %vm176_vm12 = vsmask.f32 7440 }
  0x10   :  { %v1450_v8 = vld [vmem:[#allocation6 + $0x28] sm:$0xff]  ;;  %v1449_v12 = vld [vmem:[#allocation6 + $0x20] sm:$0xff]  ;;  %v76_v21 = vld [vmem:[#allocation2 + $0xc] sm:$0x1]  ;;  %s1588_s12 = smov [#allocation11]   ;;  %s1215_s16 = sshll.u32 %s1965_s10, 4  ;;  %s1216_s16 = int_to_ptr.hbm [resolvable:$true] %s1215_s16 }
  0x11   :  { %300 = vmatpush.bf16.msra.mxu0 %v1459_v3  ;;  %v1466_v10 = vld [vmem:[#allocation6 + $0xa8] sm:$0xff]  ;;  %v73_v13 = vld [vmem:[#allocation2] sm:$0x1]  ;;  %v87_v15 = vld [vmem:[%s1955_s0] sm:$0xff]  ;;  %v77_v23 = vsel %vm1653_vm3, 0, %v76_v21  ;;  %s1213_s13 = sshll.u32 %s1588_s12, 4  ;;  %s1214_s13 = int_to_ptr.vmem [resolvable:$true] %s1213_s13 }
  0x12   :  { %379 = vmatpush.bf16.msra.mxu1 %v1451_v4  ;;  %v81_v14 = vld [vmem:[#allocation2 + $0x8] sm:$0x1]  ;;  %v1465_v16 = vld [vmem:[#allocation6 + $0xa0] sm:$0xff]  ;;  %v74_v17 = vsel %vm1653_vm3, 0, %v73_v13  ;;  %v91_v20 = vpack.c.bf16 %v87_v15, %v87_v15  ;;  %v84_v24 = vld [vmem:[#allocation2 + $0x14] sm:$0x1] }
  0x13   :  { %494 = vmatpush.bf16.msra.mxu2 %v1467_v5  ;;  %v82_v18 = vsel %vm1658_vm4, 0, %v81_v14  ;;  %v88_v19 = vld [vmem:[%s1955_s0 + $0x8] sm:$0xff]  ;;  %75 = vst [vmem:[#allocation2] sm:$0x1] %v74_v17  ;;  %v89_v25 = vld [vmem:[%s1955_s0 + $0x10] sm:$0xff]  ;;  %v85_v28 = vsel %vm1658_vm4, 0, %v84_v24  ;;  %vm1684_vm7 = vmor %vm71_vm1, %vm95_vm5 }
  0x14   :  { %v92_v22 = vpack.c.bf16 %v88_v19, %v88_v19  ;;  %83 = vst [vmem:[#allocation2 + $0x8] sm:$0x1] %v82_v18  ;;  %v98_v26 = vshrl.u32 %v91_v20, 16  ;;  %v101_v27 = vshll.u32 %v91_v20, 16  ;;  %v90_v29 = vld [vmem:[%s1955_s0 + $0x18] sm:$0xff]  ;;  %v93_v30 = vpack.c.bf16 %v89_v25, %v89_v25  ;;  %vm1690_vm8 = vmand %vm137_vm6, %vm79_vm2  ;;  %v1454_v4 = vld [vmem:[#allocation6 + $0x48] sm:$0xff] }
  0x15   :  { %301 = vmatpush.bf16.msra.mxu0 %v1458_v7  ;;  %78 = vst [vmem:[#allocation2 + $0xc] sm:$0x1] %v77_v23  ;;  %v94_v33 = vpack.c.bf16 %v90_v29, %v90_v29  ;;  %v1456_v37 = vld [vmem:[#allocation6 + $0x58] sm:$0xff]  ;;  %v1455_v54 = vld [vmem:[#allocation6 + $0x50] sm:$0xff]  ;;  %v1446_v5 = vld [vmem:[#allocation6 + $0x8] sm:$0xff]  ;;  %vm601_vm2 = vcmask 57344  }
  0x16   :  { %380 = vmatpush.bf16.msra.mxu1 %v1450_v8  ;;  %v106_v31 = vshrl.u32 %v92_v22, 16  ;;  %v109_v32 = vshll.u32 %v92_v22, 16  ;;  %v100_v34 = vrot.slane %v98_v26, 7  ;;  %86 = vst [vmem:[#allocation2 + $0x14] sm:$0x1] %v85_v28  ;;  %v115_v35 = vshrl.u32 %v93_v30, 16  ;;  %vm1708_vm13 = vmor %vm403_vm9, %vm404_vm10 }
  0x17   :  { %495 = vmatpush.bf16.msra.mxu2 %v1466_v10  ;;  %v118_v36 = vshll.u32 %v93_v30, 16  ;;  %v1448_v38 = vld [vmem:[#allocation6 + $0x18] sm:$0xff]  ;;  %v123_v41 = vshrl.u32 %v94_v33, 16  ;;  %v126_v42 = vshll.u32 %v94_v33, 16  ;;  %v1447_v55 = vld [vmem:[#allocation6 + $0x10] sm:$0xff]  ;;  %v1462_v7 = vld [vmem:[#allocation6 + $0x88] sm:$0xff] }
  0x18   :  { %v108_v40 = vrot.slane %v106_v31, 7  ;;  %v1464_v43 = vld [vmem:[#allocation6 + $0x98] sm:$0xff]  ;;  %v103_v44 = vor.u32 %v101_v27, %v100_v34  ;;  %v104_v45 = vrot.slane %v100_v34, 4  ;;  %v117_v47 = vrot.slane %v115_v35, 7  ;;  %v1463_v61 = vld [vmem:[#allocation6 + $0x90] sm:$0xff]  ;;  %v1453_v8 = vld [vmem:[#allocation6 + $0x40] sm:$0xff] }
  0x19   :  { %302 = vmatpush.bf16.msra.mxu0 %v1457_v11  ;;  %v125_v50 = vrot.slane %v123_v41, 7  ;;  %v1445_v9 = vld [vmem:[#allocation6] sm:$0xff]  ;;  %vm1716_vm14 = vmor %vm175_vm11, %vm176_vm12  ;;  %vm609_vm4 = vcmask 64512   ;;  %s1589_s17 = smov 128   ;;  %s1590_s18 = smov 8  }
  0x1a   :  { %381 = vmatpush.bf16.msra.mxu1 %v1449_v12  ;;  %v111_v48 = vor.u32 %v109_v32, %v108_v40  ;;  %v113_v49 = vrot.slane %v108_v40, 4  ;;  %v139_v51 = vld [vmem:[#allocation2] sm:$0xf]  ;;  %v120_v52 = vor.u32 %v118_v36, %v117_v47  ;;  %v121_v53 = vrot.slane %v117_v47, 4 }
  0x1b   :  { %496 = vmatpush.bf16.msra.mxu2 %v1465_v16  ;;  %v140_v57 = vsel %vm1690_vm8, %v103_v44, %v139_v51  ;;  %v143_v58 = vld [vmem:[#allocation2 + $0x8] sm:$0x1]  ;;  %v128_v59 = vor.u32 %v126_v42, %v125_v50  ;;  %v130_v60 = vrot.slane %v125_v50, 4  ;;  %v1461_v12 = vld [vmem:[#allocation6 + $0x80] sm:$0xff] }
  0x1c   :  { %v112_v56 = vsel %vm1684_vm7, %v104_v45, %v111_v48  ;;  %141 = vst [vmem:[#allocation2] sm:$0xf] %v140_v57  ;;  %v144_v62 = vsel %vm1653_vm3, %v113_v49, %v143_v58  ;;  %v146_v63 = vld [vmem:[#allocation2 + $0xc] sm:$0xf] }
  0x1d   :  { %303 = vmatpush.bf16.msra.mxu0 %v1456_v37  ;;  %142 = vst [vmem:[#allocation2 + $0x4] sm:$0xf] %v112_v56  ;;  %v129_v0 = vsel %vm1684_vm7, %v121_v53, %v128_v59  ;;  %v147_v1 = vsel %vm1690_vm8, %v120_v52, %v146_v63  ;;  %v150_v2 = vld [vmem:[#allocation2 + $0x14] sm:$0x1] }
  0x1e   :  { %382 = vmatpush.bf16.msra.mxu1 %v1448_v38  ;;  %145 = vst [vmem:[#allocation2 + $0x8] sm:$0x1] %v144_v62  ;;  %v151_v3 = vsel %vm1653_vm3, %v130_v60, %v150_v2 }
  0x1f   :  { %497 = vmatpush.bf16.msra.mxu2 %v1464_v43  ;;  %148 = vst [vmem:[#allocation2 + $0xc] sm:$0xf] %v147_v1 }
  0x20   :  { %149 = vst [vmem:[#allocation2 + $0x10] sm:$0xf] %v129_v0 }
  0x21   :  { %304 = vmatpush.bf16.msra.mxu0 %v1455_v54  ;;  %152 = vst [vmem:[#allocation2 + $0x14] sm:$0x1] %v151_v3 }
  0x22   :  { %383 = vmatpush.bf16.msra.mxu1 %v1447_v55 }
  0x23   :  { %498 = vmatpush.bf16.msra.mxu2 %v1463_v61  ;;  %v153_v10 = vld [vmem:[#allocation2] sm:$0xf] }
  0x24   :  { %v397_v11 = vld [vmem:[#allocation2] sm:$0xe]  ;;  %v154_v13 = vld [vmem:[#allocation2 + $0x4] sm:$0xf]  ;;  %v179_v14 = vshrl.u32 %v153_v10, 16  ;;  %v182_v15 = vshll.u32 %v153_v10, 16 }
  0x25   :  { %305 = vmatpush.bf16.msra.mxu0 %v1454_v4  ;;  %v1301_v17 = vrot.slane %v397_v11, 9  ;;  %v173_v18 = vld [vmem:[#allocation2 + $0x8] sm:$0x1]  ;;  %v188_v19 = vshll.u32 %v154_v13, 16  ;;  %v192_v20 = vshrl.u32 %v154_v13, 16  ;;  %v1443_v21 = vld [vmem:[#allocation2] sm:$0xff] }
  0x26   :  { %384 = vmatpush.bf16.msra.mxu1 %v1446_v5  ;;  %v408_v22 = vrot.slane %v154_v13, 5  ;;  %v181_v23 = vrot.slane %v179_v14, 4  ;;  %v184_v24 = vrot.slane %v182_v15, 5  ;;  %v198_v25 = vshll.u32 %v173_v18, 16  ;;  %v155_v27 = vld [vmem:[#allocation2 + $0xc] sm:$0xf] }
  0x27   :  { %499 = vmatpush.bf16.msra.mxu2 %v1462_v7  ;;  %v411_v26 = vrot.slane %v173_v18, 5  ;;  %v190_v28 = vrot.slane %v188_v19, 5  ;;  %v194_v29 = vrot.slane %v192_v20, 4  ;;  %v156_v32 = vld [vmem:[#allocation2 + $0x10] sm:$0xf]  ;;  %v203_v36 = vshrl.u32 %v155_v27, 16 }
  0x28   :  { %v409_v30 = vsel %vm1708_vm13, %v1301_v17, %v408_v22  ;;  %v410_v31 = vrot.slane %v408_v22, 4  ;;  %v185_v33 = vor.u32 %v184_v24, %v181_v23  ;;  %v200_v34 = vrot.slane %v198_v25, 5  ;;  %v174_v48 = vld [vmem:[#allocation2 + $0x14] sm:$0x1]  ;;  %v398_v55 = vld [vmem:[#allocation2 + $0xc] sm:$0xe] }
  0x29   :  { %306 = vmatpush.bf16.msra.mxu0 %v1453_v8  ;;  %v437_v35 = vunpack.c.l.b16 %v409_v30  ;;  %v195_v38 = vor.u32 %v194_v29, %v190_v28  ;;  %v206_v41 = vshll.u32 %v155_v27, 16  ;;  %v212_v42 = vshll.u32 %v156_v32, 16  ;;  %v1737_v20 = vld [vmem:[%s1962_s7 + $0x78] sm:$0xff]  ;;  %v1749_v22 = vld [vmem:[%s1962_s7 + $0x68] sm:$0xff]  ;;  %v1755_v23 = vld [vmem:[%s1962_s7 + $0x60] sm:$0xff] }
  0x2a   :  { %385 = vmatpush.bf16.msra.mxu1 %v1445_v9  ;;  %v412_v40 = vsel %vm1708_vm13, %v410_v31, %v411_v26  ;;  %v186_v43 = vrot.slane %v185_v33, 4  ;;  %v216_v45 = vshrl.u32 %v156_v32, 16  ;;  %v205_v49 = vrot.slane %v203_v36, 4  ;;  %v1444_v9 = vld [vmem:[#allocation2 + $0xc] sm:$0xff]  ;;  %557 = vmatpush.msra.mxu3 %v1737_v20  ;;  %v1773_v29 = vld [vmem:[%s1962_s7 + $0x48] sm:$0xff]  ;;  %v1779_v30 = vld [vmem:[%s1962_s7 + $0x40] sm:$0xff] }
  0x2b   :  { %500 = vmatpush.bf16.msra.mxu2 %v1461_v12  ;;  %v438_v44 = vunpack.c.l.b16 %v412_v40  ;;  %v196_v47 = vrot.slane %v195_v38, 4  ;;  %v208_v50 = vrot.slane %v206_v41, 5  ;;  %v214_v51 = vrot.slane %v212_v42, 5  ;;  %v1761_v25 = vld [vmem:[%s1962_s7 + $0x58] sm:$0xff]  ;;  %v1797_v36 = vld [vmem:[%s1962_s7 + $0x28] sm:$0xff]  ;;  %v1802_v38 = vld [vmem:[%s1962_s7 + $0x20] sm:$0xff] }
  0x2c   :  { %v191_v52 = vsel %vm1716_vm14, %v186_v43, %v190_v28  ;;  %v218_v54 = vrot.slane %v216_v45, 4  ;;  %v222_v59 = vshll.u32 %v174_v48, 16  ;;  %v415_v60 = vrot.slane %v156_v32, 5  ;;  %v1767_v28 = vld [vmem:[%s1962_s7 + $0x50] sm:$0xff]  ;;  %v1785_v32 = vld [vmem:[%s1962_s7 + $0x38] sm:$0xff] }
  0x2d   :  { %386 = vmatmul.bf16.vlgmr.msra.gmra.mxu1 %v1443_v21  ;;  %v441_v53 = vpack.c.b16 %v438_v44, %v437_v35  ;;  %v201_v56 = vsel %vm1716_vm14, %v196_v47, %v200_v34  ;;  %v243_v57 = vunpack.c.l.b16 %v191_v52  ;;  %v209_v61 = vor.u32 %v208_v50, %v205_v49  ;;  %v1742_v21 = vld [vmem:[%s1962_s7 + $0x70] sm:$0xff]  ;;  %v1808_v40 = vld [vmem:[%s1962_s7 + $0x18] sm:$0xff]  ;;  %v1822_v49 = vld [vmem:[%s1962_s7 + $0x8] sm:$0xff] }
  0x2e   :  { %v244_v58 = vunpack.c.l.b16 %v201_v56  ;;  %v219_v62 = vor.u32 %v218_v54, %v214_v51  ;;  %v1302_v63 = vrot.slane %v398_v55, 9  ;;  %v418_v0 = vrot.slane %v174_v48, 5  ;;  %558 = vmatpush.msra.mxu3 %v1742_v21  ;;  %v1791_v34 = vld [vmem:[%s1962_s7 + $0x30] sm:$0xff]  ;;  %v1832_v52 = vld [vmem:[%s1962_s7] sm:$0xff] }
  0x2f   :  { %501 = vmatmul.bf16.vlgmr.msra.gmra.mxu2 %v441_v53  ;;  %v417_v2 = vrot.slane %v415_v60, 4  ;;  %v224_v3 = vrot.slane %v222_v59, 5  ;;  %v210_v4 = vrot.slane %v209_v61, 4  ;;  %v1814_v45 = vld [vmem:[%s1962_s7 + $0x10] sm:$0xff] }
  0x30   :  { %v247_v1 = vpack.c.b16 %v244_v58, %v243_v57  ;;  %v220_v5 = vrot.slane %v219_v62, 4  ;;  %v416_v7 = vsel %vm1708_vm13, %v1302_v63, %v415_v60  ;;  %559 = vmatpush.msra.mxu3 %v1749_v22 }
  0x31   :  { %v419_v8 = vsel %vm1708_vm13, %v417_v2, %v418_v0  ;;  %v439_v10 = vunpack.c.l.b16 %v416_v7  ;;  %v215_v12 = vsel %vm1716_vm14, %v210_v4, %v214_v51 }
  0x32   :  { %307 = vmatmul.bf16.vlgmr.msra.gmra.mxu0 %v247_v1  ;;  %v440_v11 = vunpack.c.l.b16 %v419_v8  ;;  %v225_v13 = vsel %vm1716_vm14, %v220_v5, %v224_v3  ;;  %v245_v14 = vunpack.c.l.b16 %v215_v12  ;;  %560 = vmatpush.msra.mxu3 %v1755_v23 }
  0x33   :  { %v246_v15 = vunpack.c.l.b16 %v225_v13 }
  0x34   :  { %v442_v17 = vpack.c.b16 %v440_v11, %v439_v10  ;;  %561 = vmatpush.msra.mxu3 %v1761_v25 }
  0x35   :  { %v248_v18 = vpack.c.b16 %v246_v15, %v245_v14 }
  0x36   :  { %562 = vmatpush.msra.mxu3 %v1767_v28 }
  0x38   :  { %563 = vmatpush.msra.mxu3 %v1773_v29 }
  0x3a   :  { %564 = vmatpush.msra.mxu3 %v1779_v30 }
  0x3c   :  { %565 = vmatpush.msra.mxu3 %v1785_v32 }
  0x3d   :  { %391 = vmatmul.bf16.gmra.mxu1 %v1444_v9 }
  0x3e   :  { %566 = vmatpush.msra.mxu3 %v1791_v34 }
  0x3f   :  { %506 = vmatmul.bf16.gmra.mxu2 %v442_v17 }
  0x40   :  { %567 = vmatpush.msra.mxu3 %v1797_v36 }
  0x42   :  { %312 = vmatmul.bf16.gmra.mxu0 %v248_v18  ;;  %568 = vmatpush.msra.mxu3 %v1802_v38 }
  0x44   :  { %569 = vmatpush.msra.mxu3 %v1808_v40 }
  0x46   :  { %570 = vmatpush.msra.mxu3 %v1814_v45 }
  0x48   :  { %571 = vmatpush.msra.mxu3 %v1822_v49 }
  0x4a   :  { %572 = vmatpush.msra.mxu3 %v1832_v52 }
  0xaa   :  { %v387_v19 = vpop.f32.mrf.mxu1 }
  0xaf   :  { %v308_v24 = vpop.f32.mrf.mxu0 }
  0xb0   :  { %v388_v42 = vadd.f32 %v387_v19, %v308_v24 }
  0xb2   :  { %v502_v26 = vpop.f32.mrf.mxu2  ;;  %v389_v27 = vpop.f32.mrf.mxu1 }
  0xb3   :  { %v1825_v50 = vadd.f32 %v502_v26, %v388_v42 }
  0xb5   :  { %v526_v56 = vmul.f32 %v1825_v50, %v1825_v50 }
  0xb7   :  { %v310_v31 = vpop.f32.mrf.mxu0 }
  0xb8   :  { %v390_v43 = vadd.f32 %v389_v27, %v310_v31 }
  0xba   :  { %v504_v33 = vpop.f32.mrf.mxu2  ;;  %v392_v35 = vpop.f32.mrf.mxu1 }
  0xbb   :  { %v1817_v48 = vadd.f32 %v504_v33, %v390_v43  ;;  %v1478_v43 = vld [vmem:[#allocation9 + $0x38] sm:$0xff] }
  0xbc   :  { %937 = vmatpush.bf16.msrb.mxu1 %v1478_v43 }
  0xbd   :  { %v527_v54 = vmul.f32 %v1817_v48, %v1817_v48  ;;  %v516_v57 = vadd.f32 %v1817_v48, %v1825_v50 }
  0xbf   :  { %v313_v41 = vpop.f32.mrf.mxu0  ;;  %v530_v61 = vadd.f32 %v527_v54, %v526_v56  ;;  %v1475_v54 = vld [vmem:[#allocation9 + $0x20] sm:$0xff]  ;;  %v1484_v56 = vld [vmem:[#allocation9 + $0x68] sm:$0xff] }
  0xc0   :  { %v393_v44 = vadd.f32 %v392_v35, %v313_v41  ;;  %v608_v35 = vld [vmem:[%s1963_s8] sm:$0xff] }
  0xc1   :  { %628 = vmatpush.msrb.mxu3 %v608_v35 }
  0xc2   :  { %v507_v47 = vpop.f32.mrf.mxu2  ;;  %v394_v53 = vpop.f32.mrf.mxu1 }
  0xc3   :  { %v1827_v51 = vadd.f32 %v507_v47, %v393_v44 }
  0xc5   :  { %v528_v58 = vmul.f32 %v1827_v51, %v1827_v51  ;;  %v517_v62 = vadd.f32 %v516_v57, %v1827_v51  ;;  %v1491_v57 = vld [vmem:[#allocation9 + $0xa0] sm:$0xff] }
  0xc7   :  { %v315_v55 = vpop.f32.mrf.mxu0  ;;  %v531_v0 = vadd.f32 %v530_v61, %v528_v58  ;;  %v1473_v58 = vld [vmem:[#allocation9 + $0x10] sm:$0xff]  ;;  %v1472_v61 = vld [vmem:[#allocation9 + $0x8] sm:$0xff] }
  0xc8   :  { %v395_v59 = vadd.f32 %v394_v53, %v315_v55  ;;  %v1492_v55 = vld [vmem:[#allocation9 + $0xa8] sm:$0xff] }
  0xca   :  { %v509_v60 = vpop.f32.mrf.mxu2 }
  0xcb   :  { %v1845_v63 = vadd.f32 %v509_v60, %v395_v59  ;;  %v1483_v59 = vld [vmem:[#allocation9 + $0x60] sm:$0xff]  ;;  %v1490_v60 = vld [vmem:[#allocation9 + $0x98] sm:$0xff] }
  0xcd   :  { %v518_v1 = vadd.f32 %v517_v62, %v1845_v63  ;;  %v529_v2 = vmul.f32 %v1845_v63, %v1845_v63  ;;  %v1482_v62 = vld [vmem:[#allocation9 + $0x58] sm:$0xff] }
  0xcf   :  { %v519_v3 = vrot.slane %v518_v1, 4  ;;  %v532_v4 = vadd.f32 %v531_v0, %v529_v2  ;;  %v1489_v0 = vld [vmem:[#allocation9 + $0x90] sm:$0xff] }
  0xd0   :  { %v1481_v2 = vld [vmem:[#allocation9 + $0x50] sm:$0xff] }
  0xd1   :  { %v520_v5 = vadd.f32 %v519_v3, %v518_v1  ;;  %v533_v7 = vrot.slane %v532_v4, 4  ;;  %v1471_v1 = vld [vmem:[#allocation9] sm:$0xff] }
  0xd3   :  { %v521_v8 = vrot.slane %v520_v5, 2  ;;  %v534_v9 = vadd.f32 %v533_v7, %v532_v4  ;;  %v1488_v4 = vld [vmem:[#allocation9 + $0x88] sm:$0xff] }
  0xd5   :  { %v522_v10 = vadd.f32 %v521_v8, %v520_v5  ;;  %v535_v11 = vrot.slane %v534_v9, 2 }
  0xd7   :  { %v523_v12 = vrot.slane %v522_v10, 1  ;;  %v536_v13 = vadd.f32 %v535_v11, %v534_v9 }
  0xd9   :  { %v524_v14 = vadd.f32 %v523_v12, %v522_v10  ;;  %v537_v15 = vrot.slane %v536_v13, 1  ;;  %v1480_v12 = vld [vmem:[#allocation9 + $0x48] sm:$0xff] }
  0xdb   :  { %525 = vst [vmem:[#allocation3] sm:$0x1] %v524_v14  ;;  %v538_v17 = vadd.f32 %v537_v15, %v536_v13  ;;  %v648_v13 = vstv %s1964_s9  ;;  %v1487_v14 = vld [vmem:[#allocation9 + $0x80] sm:$0xff] }
  0xdd   :  { %539 = vst [vmem:[#allocation3 + $0x1] sm:$0x1] %v538_v17 }
  0xe4   :  { %v540_v18 = vld [vmem:[#allocation3] sm:$0x3] }
  0xe5   :  { %573 = vmatmul.f32.vlgmr.msra.gmra.mxu3 %v540_v18 }
  0xe6   :  { %1113 = vmatpush.msra.mxu3 %v1737_v20 }
  0xe8   :  { %1114 = vmatpush.msra.mxu3 %v1742_v21 }
  0xea   :  { %1115 = vmatpush.msra.mxu3 %v1749_v22  ;;  %v583_v22 = vld [vmem:[%s1958_s3] sm:$0x1] }
  0xec   :  { %1116 = vmatpush.msra.mxu3 %v1755_v23 }
  0xee   :  { %1117 = vmatpush.msra.mxu3 %v1761_v25 }
  0xf0   :  { %1118 = vmatpush.msra.mxu3 %v1767_v28  ;;  %v603_v28 = vld [vmem:[%s1959_s4] sm:$0x1] }
  0xf2   :  { %1119 = vmatpush.msra.mxu3 %v1773_v29 }
  0xf4   :  { %1120 = vmatpush.msra.mxu3 %v1779_v30 }
  0xf6   :  { %1121 = vmatpush.msra.mxu3 %v1785_v32 }
  0xf8   :  { %1122 = vmatpush.msra.mxu3 %v1791_v34  ;;  %v1477_v34 = vld [vmem:[#allocation9 + $0x30] sm:$0xff] }
  0xf9   :  { %938 = vmatpush.bf16.msrb.mxu1 %v1477_v34  ;;  %v705_v34 = vld [vmem:[#allocation2 + $0x8] sm:$0x1] }
  0xfa   :  { %1123 = vmatpush.msra.mxu3 %v1797_v36  ;;  %v1494_v36 = vld [vmem:[#allocation9 + $0xb8] sm:$0xff] }
  0xfb   :  { %1049 = vmatpush.bf16.msrb.mxu2 %v1494_v36 }
  0xfc   :  { %1124 = vmatpush.msra.mxu3 %v1802_v38  ;;  %v1476_v38 = vld [vmem:[#allocation9 + $0x28] sm:$0xff] }
  0xfd   :  { %939 = vmatpush.bf16.msrb.mxu1 %v1476_v38 }
  0xfe   :  { %1125 = vmatpush.msra.mxu3 %v1808_v40  ;;  %v1486_v40 = vld [vmem:[#allocation9 + $0x78] sm:$0xff] }
  0xff   :  { %858 = vmatpush.bf16.msrb.mxu0 %v1486_v40 }
 0x100   :  { %1126 = vmatpush.msra.mxu3 %v1814_v45  ;;  %v1493_v45 = vld [vmem:[#allocation9 + $0xb0] sm:$0xff] }
 0x101   :  { %1050 = vmatpush.bf16.msrb.mxu2 %v1493_v45  ;;  %940 = vmatpush.bf16.msrb.mxu1 %v1475_v54  ;;  %v712_v54 = vld [vmem:[#allocation2 + $0x14] sm:$0x1] }
 0x102   :  { %1127 = vmatpush.msra.mxu3 %v1822_v49  ;;  %v1485_v49 = vld [vmem:[#allocation9 + $0x70] sm:$0xff] }
 0x103   :  { %859 = vmatpush.bf16.msrb.mxu0 %v1485_v49 }
 0x104   :  { %1128 = vmatpush.msra.mxu3 %v1832_v52  ;;  %v1474_v52 = vld [vmem:[#allocation9 + $0x18] sm:$0xff] }
 0x105   :  { %1051 = vmatpush.bf16.msrb.mxu2 %v1492_v55  ;;  %941 = vmatpush.bf16.msrb.mxu1 %v1474_v52 }
 0x107   :  { %860 = vmatpush.bf16.msrb.mxu0 %v1484_v56 }
 0x109   :  { %1052 = vmatpush.bf16.msrb.mxu2 %v1491_v57  ;;  %942 = vmatpush.bf16.msrb.mxu1 %v1473_v58  ;;  %v701_v57 = vld [vmem:[#allocation2] sm:$0xf] }
 0x10b   :  { %861 = vmatpush.bf16.msrb.mxu0 %v1483_v59 }
 0x10d   :  { %1053 = vmatpush.bf16.msrb.mxu2 %v1490_v60  ;;  %943 = vmatpush.bf16.msrb.mxu1 %v1472_v61  ;;  %v708_v60 = vld [vmem:[#allocation2 + $0xc] sm:$0xf] }
 0x10f   :  { %862 = vmatpush.bf16.msrb.mxu0 %v1482_v62 }
 0x111   :  { %1054 = vmatpush.bf16.msrb.mxu2 %v1489_v0  ;;  %944 = vmatpush.bf16.msrb.mxu1 %v1471_v1 }
 0x113   :  { %863 = vmatpush.bf16.msrb.mxu0 %v1481_v2 }
 0x115   :  { %1055 = vmatpush.bf16.msrb.mxu2 %v1488_v4 }
 0x117   :  { %864 = vmatpush.bf16.msrb.mxu0 %v1480_v12 }
 0x119   :  { %1056 = vmatpush.bf16.msrb.mxu2 %v1487_v14 }
 0x168   :  { %v574_v19 = vpop.f32.mrf.mxu3 }
 0x169   :  { %v577_v24 = vmul.f32 0.001953125, %v574_v19 }
 0x16b   :  { %v578_v26 = vmul.f32 %v577_v24, %v577_v24 }
 0x16d   :  { %v580_v27 = vrot.slane %v578_v26, 7 }
 0x16f   :  { %v582_v31 = vsub.f32 %v577_v24, %v580_v27 }
 0x171   :  { %v584_v33 = vadd.f32 1e-05, %v582_v31 }
 0x173   :  { %1502 = vrsqrt.f32 %v584_v33  ;;  %vm591_vm0 = vweird.f32 %v584_v33 }
 0x179   :  { %v1503_v41 = vpop.eup %1502 }
 0x17a   :  { %v586_v42 = vmul.f32 %v1503_v41, %v584_v33  ;;  %vm592_vm15 = vweird.f32 %v1503_v41 }
 0x17b   :  { %vm593_vm1 = vmor %vm591_vm0, %vm592_vm15 }
 0x17c   :  { %v587_v44 = vmul.f32 %v1503_v41, %v586_v42 }
 0x17e   :  { %v588_v47 = vmul.f32 0.5, %v587_v44 }
 0x180   :  { %v589_v53 = vsub.f32 1.5, %v588_v47 }
 0x182   :  { %v590_v20 = vmul.f32 %v1503_v41, %v589_v53 }
 0x184   :  { %v594_v21 = vsel %vm593_vm1, %v1503_v41, %v590_v20 }
 0x185   :  { %596 = vst [vmem:[#allocation1] sm:$0xff] %v594_v21 }
 0x18c   :  { %v598_v23 = vld [vmem:[#allocation1 + $0x1] ss:$9 sm:$0xff] }
 0x18d   :  { %v600_v25 = vmul.f32 %v598_v23, %v583_v22 }
 0x18f   :  { %602 = vst.msk [vmem:[#allocation4] sm:$0x1] %vm601_vm2, %v600_v25  ;;  %v604_v29 = vmul.f32 %v600_v25, %v577_v24 }
 0x191   :  { %v605_v30 = vsub.f32 %v603_v28, %v604_v29 }
 0x193   :  { %606 = vst.msk [vmem:[#allocation4 + $0x1] sm:$0x1] %vm601_vm2, %v605_v30 }
 0x19a   :  { %v607_v32 = vld [vmem:[#allocation4] sm:$0x3] }
 0x19b   :  { %1335 = vmatmul.msk.f32.vlgmr.msrb.gmra.mxu3 %vm609_vm4, %v607_v32 }
 0x19c   :  { %1182 = vmatpush.msrb.mxu3 %v608_v35 }
 0x21e   :  { %v630_v3 = vpop.f32.mrf.mxu3 }
 0x21f   :  { %v633_v5 = vperm.slane %v630_v3, 0  ;;  %v638_v7 = vperm.slane %v630_v3, 1 }
 0x221   :  { %v634_v8 = vmul.f32 %v633_v5, %v1825_v50  ;;  %v635_v9 = vmul.f32 %v633_v5, %v1817_v48  ;;  %v636_v10 = vmul.f32 %v633_v5, %v1827_v51  ;;  %v637_v11 = vmul.f32 %v633_v5, %v1845_v63  ;;  %v1479_v48 = vld [vmem:[#allocation9 + $0x40] sm:$0xff] }
 0x222   :  { %865 = vmatpush.bf16.msrb.mxu0 %v1479_v48 }
 0x223   :  { %v639_v15 = vadd.f32 %v638_v7, %v634_v8  ;;  %v640_v17 = vadd.f32 %v638_v7, %v635_v9  ;;  %v641_v18 = vadd.f32 %v638_v7, %v636_v10  ;;  %v642_v19 = vadd.f32 %v638_v7, %v637_v11 }
 0x225   :  { %vm644_vm5 = vcmp.gt.f32.partialorder %v639_v15, 0.0  ;;  %vm645_vm6 = vcmp.gt.f32.partialorder %v640_v17, 0.0  ;;  %vm646_vm9 = vcmp.gt.f32.partialorder %v641_v18, 0.0  ;;  %vm647_vm10 = vcmp.gt.f32.partialorder %v642_v19, 0.0 }
 0x226   :  { %v649_v50 = vmul.f32 %v648_v13, %v639_v15  ;;  %v650_v51 = vmul.f32 %v648_v13, %v640_v17  ;;  %v651_v63 = vmul.f32 %v648_v13, %v641_v18  ;;  %v652_v24 = vmul.f32 %v648_v13, %v642_v19 }
 0x228   :  { %v653_v26 = vsel %vm644_vm5, %v639_v15, %v649_v50  ;;  %v654_v27 = vsel %vm645_vm6, %v640_v17, %v650_v51  ;;  %v655_v31 = vsel %vm646_vm9, %v641_v18, %v651_v63  ;;  %v656_v33 = vsel %vm647_vm10, %v642_v19, %v652_v24 }
 0x229   :  { %v657_v35 = vpack.c.bf16 %v653_v26, %v653_v26  ;;  %v658_v41 = vpack.c.bf16 %v654_v27, %v654_v27  ;;  %v659_v42 = vpack.c.bf16 %v655_v31, %v655_v31  ;;  %v660_v43 = vpack.c.bf16 %v656_v33, %v656_v33 }
 0x22b   :  { %v662_v44 = vshrl.u32 %v657_v35, 16  ;;  %v670_v47 = vshrl.u32 %v658_v41, 16  ;;  %v679_v53 = vshrl.u32 %v659_v42, 16  ;;  %v687_v20 = vshrl.u32 %v660_v43, 16 }
 0x22c   :  { %v665_v22 = vshll.u32 %v657_v35, 16  ;;  %v673_v25 = vshll.u32 %v658_v41, 16  ;;  %v682_v29 = vshll.u32 %v659_v42, 16  ;;  %v690_v32 = vshll.u32 %v660_v43, 16 }
 0x22d   :  { %v664_v21 = vrot.slane %v662_v44, 7  ;;  %v672_v23 = vrot.slane %v670_v47, 7  ;;  %v681_v28 = vrot.slane %v679_v53, 7  ;;  %v689_v30 = vrot.slane %v687_v20, 7 }
 0x22f   :  { %v667_v36 = vor.u32 %v665_v22, %v664_v21  ;;  %v668_v38 = vrot.slane %v664_v21, 4  ;;  %v675_v40 = vor.u32 %v673_v25, %v672_v23  ;;  %v677_v45 = vrot.slane %v672_v23, 4 }
 0x230   :  { %v684_v49 = vor.u32 %v682_v29, %v681_v28  ;;  %v685_v55 = vrot.slane %v681_v28, 4  ;;  %v692_v52 = vor.u32 %v690_v32, %v689_v30  ;;  %v694_v56 = vrot.slane %v689_v30, 4 }
 0x231   :  { %v676_v58 = vsel %vm1684_vm7, %v668_v38, %v675_v40  ;;  %v706_v59 = vsel %vm1653_vm3, %v677_v45, %v705_v34  ;;  %v702_v0 = vsel %vm1690_vm8, %v667_v36, %v701_v57 }
 0x232   :  { %v693_v61 = vsel %vm1684_vm7, %v685_v55, %v692_v52  ;;  %704 = vst [vmem:[#allocation2 + $0x4] sm:$0xf] %v676_v58  ;;  %v713_v62 = vsel %vm1653_vm3, %v694_v56, %v712_v54  ;;  %v709_v1 = vsel %vm1690_vm8, %v684_v49, %v708_v60 }
 0x233   :  { %707 = vst [vmem:[#allocation2 + $0x8] sm:$0x1] %v706_v59 }
 0x234   :  { %711 = vst [vmem:[#allocation2 + $0x10] sm:$0xf] %v693_v61 }
 0x235   :  { %714 = vst [vmem:[#allocation2 + $0x14] sm:$0x1] %v713_v62 }
 0x236   :  { %703 = vst [vmem:[#allocation2] sm:$0xf] %v702_v0 }
 0x237   :  { %710 = vst [vmem:[#allocation2 + $0xc] sm:$0xf] %v709_v1 }
 0x239   :  { %v716_v2 = vld [vmem:[#allocation2 + $0x4] sm:$0xf] }
 0x23a   :  { %v735_v3 = vld [vmem:[#allocation2 + $0x8] sm:$0x1]  ;;  %v964_v4 = vrot.slane %v716_v2, 5  ;;  %v747_v39 = vshll.u32 %v716_v2, 16  ;;  %v751_v5 = vshrl.u32 %v716_v2, 16 }
 0x23b   :  { %v967_v8 = vrot.slane %v735_v3, 5  ;;  %v757_v13 = vshll.u32 %v735_v3, 16  ;;  %v718_v31 = vld [vmem:[#allocation2 + $0x10] sm:$0xf] }
 0x23c   :  { %v966_v7 = vrot.slane %v964_v4, 4  ;;  %v749_v6 = vrot.slane %v747_v39, 5  ;;  %v753_v9 = vrot.slane %v751_v5, 4  ;;  %v971_v47 = vrot.slane %v718_v31, 5  ;;  %v736_v30 = vld [vmem:[#allocation2 + $0x14] sm:$0x1] }
 0x23d   :  { %v1469_v10 = vld [vmem:[#allocation2] sm:$0xff]  ;;  %v759_v27 = vrot.slane %v757_v13, 5  ;;  %v771_v53 = vshll.u32 %v718_v31, 16  ;;  %v775_v21 = vshrl.u32 %v718_v31, 16  ;;  %v974_v45 = vrot.slane %v736_v30, 5 }
 0x23e   :  { %v956_v11 = vld [vmem:[#allocation2] sm:$0xe]  ;;  %v968_v46 = vsel %vm1708_vm13, %v966_v7, %v967_v8  ;;  %945 = vmatmul.bf16.vlgmr.msrb.gmra.mxu1 %v1469_v10  ;;  %v754_v19 = vor.u32 %v753_v9, %v749_v6  ;;  %v717_v48 = vld [vmem:[#allocation2 + $0xc] sm:$0xf]  ;;  %v973_v36 = vrot.slane %v971_v47, 4  ;;  %v781_v52 = vshll.u32 %v736_v30, 16 }
 0x23f   :  { %v715_v12 = vld [vmem:[#allocation2] sm:$0xf]  ;;  %v1408_v14 = vrot.slane %v956_v11, 9  ;;  %v994_v18 = vunpack.c.l.b16 %v968_v46  ;;  %v762_v35 = vshrl.u32 %v717_v48, 16  ;;  %v765_v41 = vshll.u32 %v717_v48, 16  ;;  %v1470_v56 = vld [vmem:[#allocation2 + $0xc] sm:$0xff] }
 0x240   :  { %v738_v15 = vshrl.u32 %v715_v12, 16  ;;  %v741_v17 = vshll.u32 %v715_v12, 16  ;;  %v755_v26 = vrot.slane %v754_v19, 4  ;;  %v773_v28 = vrot.slane %v771_v53, 5  ;;  %v957_v32 = vld [vmem:[#allocation2 + $0xc] sm:$0xe] }
 0x241   :  { %v965_v50 = vsel %vm1708_vm13, %v1408_v14, %v964_v4  ;;  %v764_v23 = vrot.slane %v762_v35, 4  ;;  %v767_v25 = vrot.slane %v765_v41, 5  ;;  %v777_v34 = vrot.slane %v775_v21, 4 }
 0x242   :  { %v740_v51 = vrot.slane %v738_v15, 4  ;;  %v743_v63 = vrot.slane %v741_v17, 5  ;;  %v993_v24 = vunpack.c.l.b16 %v965_v50  ;;  %v760_v43 = vsel %vm1716_vm14, %v755_v26, %v759_v27 }
 0x243   :  { %v803_v20 = vunpack.c.l.b16 %v760_v43  ;;  %v1409_v40 = vrot.slane %v957_v32, 9  ;;  %v768_v54 = vor.u32 %v767_v25, %v764_v23  ;;  %v778_v49 = vor.u32 %v777_v34, %v773_v28 }
 0x244   :  { %v744_v33 = vor.u32 %v743_v63, %v740_v51  ;;  %v997_v42 = vpack.c.b16 %v994_v18, %v993_v24  ;;  %v975_v55 = vsel %vm1708_vm13, %v973_v36, %v974_v45  ;;  %v783_v61 = vrot.slane %v781_v52, 5 }
 0x245   :  { %v972_v57 = vsel %vm1708_vm13, %v1409_v40, %v971_v47  ;;  %v769_v58 = vrot.slane %v768_v54, 4  ;;  %v779_v59 = vrot.slane %v778_v49, 4  ;;  %v996_v60 = vunpack.c.l.b16 %v975_v55 }
 0x246   :  { %v745_v44 = vrot.slane %v744_v33, 4  ;;  %1057 = vmatmul.bf16.vlgmr.msrb.gmra.mxu2 %v997_v42  ;;  %v995_v62 = vunpack.c.l.b16 %v972_v57 }
 0x247   :  { %v774_v0 = vsel %vm1716_vm14, %v769_v58, %v773_v28  ;;  %v784_v1 = vsel %vm1716_vm14, %v779_v59, %v783_v61  ;;  %v1139_v61 = vld [vmem:[%s1960_s5] sm:$0x1] }
 0x248   :  { %v750_v22 = vsel %vm1716_vm14, %v745_v44, %v749_v6  ;;  %v998_v2 = vpack.c.b16 %v996_v60, %v995_v62  ;;  %v804_v3 = vunpack.c.l.b16 %v774_v0  ;;  %v805_v4 = vunpack.c.l.b16 %v784_v1  ;;  %v1158_v1 = vld [vmem:[%s1961_s6] sm:$0x1] }
 0x249   :  { %v802_v29 = vunpack.c.l.b16 %v750_v22 }
 0x24a   :  { %v807_v39 = vpack.c.b16 %v805_v4, %v804_v3 }
 0x24b   :  { %v806_v38 = vpack.c.b16 %v803_v20, %v802_v29 }
 0x24d   :  { %866 = vmatmul.bf16.vlgmr.msrb.gmra.mxu0 %v806_v38 }
 0x24e   :  { %950 = vmatmul.bf16.gmra.mxu1 %v1470_v56 }
 0x256   :  { %1062 = vmatmul.bf16.gmra.mxu2 %v998_v2 }
 0x25d   :  { %871 = vmatmul.bf16.gmra.mxu0 %v807_v39 }
 0x2bb   :  { %v946_v16 = vpop.f32.mrf.mxu1 }
 0x2c3   :  { %v948_v8 = vpop.f32.mrf.mxu1 }
 0x2c9   :  { %v1058_v7 = vpop.f32.mrf.mxu2 }
 0x2ca   :  { %v867_v5 = vpop.f32.mrf.mxu0 }
 0x2cb   :  { %v951_v10 = vpop.f32.mrf.mxu1  ;;  %v947_v14 = vadd.f32 %v946_v16, %v867_v5 }
 0x2cd   :  { %v1915_v15 = vadd.f32 %v1058_v7, %v947_v14 }
 0x2cf   :  { %v1082_v51 = vmul.f32 %v1915_v15, %v1915_v15 }
 0x2d1   :  { %v1060_v9 = vpop.f32.mrf.mxu2 }
 0x2d2   :  { %v869_v6 = vpop.f32.mrf.mxu0 }
 0x2d3   :  { %v949_v11 = vadd.f32 %v948_v8, %v869_v6  ;;  %v953_v19 = vpop.f32.mrf.mxu1 }
 0x2d5   :  { %v1913_v37 = vadd.f32 %v1060_v9, %v949_v11  ;;  %v1198_v11 = vld [vmem:[%s1955_s0 + $0x8] sm:$0xff] }
 0x2d7   :  { %v1083_v18 = vmul.f32 %v1913_v37, %v1913_v37  ;;  %v1072_v63 = vadd.f32 %v1913_v37, %v1915_v15 }
 0x2d9   :  { %v1063_v13 = vpop.f32.mrf.mxu2  ;;  %v1086_v27 = vadd.f32 %v1083_v18, %v1082_v51 }
 0x2da   :  { %v872_v12 = vpop.f32.mrf.mxu0 }
 0x2db   :  { %v952_v46 = vadd.f32 %v951_v10, %v872_v12  ;;  %v1197_v10 = vld [vmem:[%s1955_s0] sm:$0xff]  ;;  %v1199_v12 = vld [vmem:[%s1955_s0 + $0x10] sm:$0xff] }
 0x2dd   :  { %v1917_v17 = vadd.f32 %v1063_v13, %v952_v46 }
 0x2df   :  { %v1084_v24 = vmul.f32 %v1917_v17, %v1917_v17  ;;  %v1073_v31 = vadd.f32 %v1072_v63, %v1917_v17 }
 0x2e1   :  { %v1065_v50 = vpop.f32.mrf.mxu2  ;;  %v1087_v35 = vadd.f32 %v1086_v27, %v1084_v24 }
 0x2e2   :  { %v874_v48 = vpop.f32.mrf.mxu0 }
 0x2e3   :  { %v954_v26 = vadd.f32 %v953_v19, %v874_v48 }
 0x2e5   :  { %v1071_v33 = vadd.f32 %v1065_v50, %v954_v26 }
 0x2e7   :  { %v1074_v41 = vadd.f32 %v1073_v31, %v1071_v33  ;;  %v1085_v42 = vmul.f32 %v1071_v33, %v1071_v33 }
 0x2e9   :  { %v1075_v43 = vrot.slane %v1074_v41, 4  ;;  %v1088_v44 = vadd.f32 %v1087_v35, %v1085_v42 }
 0x2eb   :  { %v1076_v47 = vadd.f32 %v1075_v43, %v1074_v41  ;;  %v1089_v53 = vrot.slane %v1088_v44, 4 }
 0x2ed   :  { %v1077_v20 = vrot.slane %v1076_v47, 2  ;;  %v1090_v21 = vadd.f32 %v1089_v53, %v1088_v44 }
 0x2ef   :  { %v1078_v22 = vadd.f32 %v1077_v20, %v1076_v47  ;;  %v1091_v23 = vrot.slane %v1090_v21, 2 }
 0x2f1   :  { %v1079_v25 = vrot.slane %v1078_v22, 1  ;;  %v1092_v28 = vadd.f32 %v1091_v23, %v1090_v21 }
 0x2f3   :  { %v1080_v29 = vadd.f32 %v1079_v25, %v1078_v22  ;;  %v1093_v30 = vrot.slane %v1092_v28, 1 }
 0x2f5   :  { %1081 = vst [vmem:[#allocation3] sm:$0x1] %v1080_v29  ;;  %v1094_v32 = vadd.f32 %v1093_v30, %v1092_v28 }
 0x2f7   :  { %1095 = vst [vmem:[#allocation3 + $0x1] sm:$0x1] %v1094_v32 }
 0x2fe   :  { %v1096_v34 = vld [vmem:[#allocation3] sm:$0x3] }
 0x2ff   :  { %1129 = vmatmul.f32.vlgmr.msra.gmra.mxu3 %v1096_v34 }
 0x382   :  { %v1130_v36 = vpop.f32.mrf.mxu3 }
 0x383   :  { %v1133_v38 = vmul.f32 0.001953125, %v1130_v36 }
 0x385   :  { %v1134_v40 = vmul.f32 %v1133_v38, %v1133_v38 }
 0x387   :  { %v1136_v45 = vrot.slane %v1134_v40, 7 }
 0x389   :  { %v1138_v54 = vsub.f32 %v1133_v38, %v1136_v45 }
 0x38b   :  { %v1140_v49 = vadd.f32 1e-05, %v1138_v54 }
 0x38d   :  { %1504 = vrsqrt.f32 %v1140_v49  ;;  %vm1147_vm7 = vweird.f32 %v1140_v49 }
 0x393   :  { %v1505_v55 = vpop.eup %1504 }
 0x394   :  { %v1142_v52 = vmul.f32 %v1505_v55, %v1140_v49  ;;  %vm1148_vm3 = vweird.f32 %v1505_v55 }
 0x395   :  { %vm1149_vm8 = vmor %vm1147_vm7, %vm1148_vm3 }
 0x396   :  { %v1143_v56 = vmul.f32 %v1505_v55, %v1142_v52 }
 0x398   :  { %v1144_v57 = vmul.f32 0.5, %v1143_v56 }
 0x39a   :  { %v1145_v58 = vsub.f32 1.5, %v1144_v57 }
 0x39c   :  { %v1146_v59 = vmul.f32 %v1505_v55, %v1145_v58 }
 0x39e   :  { %v1150_v60 = vsel %vm1149_vm8, %v1505_v55, %v1146_v59 }
 0x39f   :  { %1152 = vst [vmem:[#allocation1] sm:$0xff] %v1150_v60 }
 0x3a6   :  { %v1154_v62 = vld [vmem:[#allocation1 + $0x1] ss:$9 sm:$0xff] }
 0x3a7   :  { %v1156_v0 = vmul.f32 %v1154_v62, %v1139_v61 }
 0x3a9   :  { %1157 = vst.msk [vmem:[#allocation4] sm:$0x1] %vm601_vm2, %v1156_v0  ;;  %v1159_v2 = vmul.f32 %v1156_v0, %v1133_v38 }
 0x3ab   :  { %v1160_v3 = vsub.f32 %v1158_v1, %v1159_v2 }
 0x3ad   :  { %1161 = vst.msk [vmem:[#allocation4 + $0x1] sm:$0x1] %vm601_vm2, %v1160_v3 }
 0x3b4   :  { %v1162_v4 = vld [vmem:[#allocation4] sm:$0x3] }
 0x3b5   :  { %1442 = vmatmul.msk.f32.vlgmr.msrb.gmra.mxu3 %vm609_vm4, %v1162_v4 }
 0x438   :  { %v1184_v39 = vpop.f32.mrf.mxu3 }
 0x439   :  { %v1187_v16 = vperm.slane %v1184_v39, 0  ;;  %v1192_v5 = vperm.slane %v1184_v39, 1 }
 0x43b   :  { %v1188_v7 = vmul.f32 %v1187_v16, %v1915_v15  ;;  %v1189_v8 = vmul.f32 %v1187_v16, %v1913_v37  ;;  %v1190_v6 = vmul.f32 %v1187_v16, %v1917_v17  ;;  %v1191_v9 = vmul.f32 %v1187_v16, %v1071_v33  ;;  %v1200_v37 = vld [vmem:[%s1955_s0 + $0x18] sm:$0xff] }
 0x43d   :  { %v1193_v13 = vadd.f32 %v1192_v5, %v1188_v7  ;;  %v1194_v14 = vadd.f32 %v1192_v5, %v1189_v8  ;;  %v1195_v46 = vadd.f32 %v1192_v5, %v1190_v6  ;;  %v1196_v15 = vadd.f32 %v1192_v5, %v1191_v9 }
 0x43f   :  { %v1201_v17 = vadd.f32 %v1197_v10, %v1193_v13  ;;  %v1202_v18 = vadd.f32 %v1198_v11, %v1194_v14  ;;  %v1203_v19 = vadd.f32 %v1199_v12, %v1195_v46  ;;  %v1204_v48 = vadd.f32 %v1200_v37, %v1196_v15 }
 0x441   :  { %1205 = vst [vmem:[#allocation11] sm:$0xff] %v1201_v17 }
 0x442   :  { %1206 = vst [vmem:[#allocation11 + $0x8] sm:$0xff] %v1202_v18 }
 0x443   :  { %1207 = vst [vmem:[#allocation11 + $0x10] sm:$0xff] %v1203_v19 }
 0x444   :  { %1208 = vst [vmem:[#allocation11 + $0x18] sm:$0xff] %v1204_v48 }
 0x445   :  { %1221 = dma.vmem_to_hbm [thread:$0]  %s1214_s13, 512, %s1216_s16, [#allocation8], %s1589_s17, %s1589_s17, %s1590_s18  }
 0x446   :  { %1582 = dma.done.wait [#allocation8], 512  }
 0x447   :  { %1583 = vsyncadd [#allocation8], 4294966784 }
 0x448   :  { %1226 = vsyncpa [#allocation7], 1 }
 0x449   :  { %1227 = vsyncpa [#allocation10], 1 }
 0x44a   :  { %1228 = vsyncpa [#allocation8], 1 }

</bundles_post_ra>
